<compile_context>
chip_gen: v5e
topology: v5e:2x2
jax: 0.10.0
libtpu: 0.0.40
codegen_flags: <defaults>
</compile_context>

<pallas_src>
import jax
import jax.numpy as jnp
from jax import lax
from jax.experimental import pallas as pl
from jax.experimental.pallas import tpu as pltpu

NEG_SLOPE = 0.01  # nn.LeakyReLU default


def _leaky_relu(x):
    # For 0 < slope < 1: max(x, slope*x) == leaky_relu(x)  (one vmul + one vmax).
    return jnp.maximum(x, NEG_SLOPE * x)


def _round_up(x, m):
    return ((x + m - 1) // m) * m


def _tpu_vmem_capacity():
    try:
        return int(pltpu.get_tpu_info().vmem_capacity_bytes)
    except Exception:
        return 64 * 1024 * 1024  # conservative (v7x per-TensorCore)


def _choose_tiling(B, bt_max):
    """Pick (batch_tile, n_tiles).  Tiles are multiples of 128 (lane-dense);
    when tiled, n_tiles is kept even so v7x's two TensorCores stay balanced."""
    bt_max = max(128, (bt_max // 128) * 128)
    if B <= bt_max:
        return _round_up(max(B, 1), 128), 1
    n = pl.cdiv(B, bt_max)
    if n % 2:
        n += 1
    bt = _round_up(pl.cdiv(B, n), 128)
    n = pl.cdiv(B, bt)
    if n > 1 and n % 2:
        n += 1
    return bt, n


def _vmem_limit(bt, batch_major_out, cap_bytes):
    """Derive the scoped-VMEM limit from the tile instead of hard-coding it."""
    est = (
        2 * bt * 128                                   # x stream (double-buffered)
        + (2 * bt * 512 if batch_major_out else 2 * bt * 64)   # output stream
        + bt * (128 + 64 + 4) * 4 * 2                  # f32 intermediates + headroom
        + (4 << 20)                                    # weights / compiler slack
    )
    ceiling = min(int(cap_bytes * 0.75), 96 << 20)     # ~48 MiB on v7x, ~96 MiB v5e/v6e
    return int(max(32 << 20, min(est, ceiling)))


def _make_kernel(compute_dtype, epilogue_dtype, batch_major_out):
    cdims = (((1,), (0,)), ((), ()))  # contract lhs dim1 with rhs dim0

    def kernel(x_ref, w1_ref, w2_ref, b2_ref, w3_ref, b3_ref, o_ref):
        # Layer 1: (128,10) @ (10,bt); bias folded into the 10th column of w1.
        h1 = lax.dot_general(w1_ref[...], x_ref[...], cdims,
                             preferred_element_type=jnp.float32)       # (128, bt)
        a1 = _leaky_relu(h1.astype(epilogue_dtype)).astype(compute_dtype)
        # Dropout(0.3) is identity in eval/inference mode.
        # Layer 2: (64,128) @ (128,bt)
        h2 = lax.dot_general(w2_ref[...], a1, cdims,
                             preferred_element_type=jnp.float32)       # (64, bt)
        a2 = _leaky_relu(h2.astype(epilogue_dtype) + b2_ref[...]).astype(compute_dtype)
        # Layer 3
        if batch_major_out:
            # trans-LHS matmul: (64,bt)^T @ (4,64)^T -> (bt,4); keeps all
            # operands sublane/lane aligned (no unaligned transpose).
            out = lax.dot_general(a2, w3_ref[...], (((0,), (1,)), ((), ())),
                                  preferred_element_type=jnp.float32)  # (bt, 4)
            o_ref[...] = (out + b3_ref[...]).astype(o_ref.dtype)       # b3 is (1,4)
        else:
            out = lax.dot_general(w3_ref[...], a2, cdims,
                                  preferred_element_type=jnp.float32)  # (4, bt)
            o_ref[...] = (out + b3_ref[...]).astype(o_ref.dtype)       # b3 is (4,1)

    return kernel


def accident_severity_forward(x, params, *, b_tile=None,
                              compute_dtype=jnp.bfloat16,
                              epilogue_dtype=jnp.float32,
                              feature_major_output=False,
                              x_feature_major=False,
                              vmem_limit_bytes=None):
    """Forward pass of AccidentSeverityModel (eval mode).

    x: (B, 9) float32 (or (9, B) if x_feature_major=True).
    params: PyTorch-layout weights w1(128,9), w2(64,128), w3(4,64) and biases
            b1(128,1), b2(64,1), b3(4,1), all float32.
    Returns logits: (B, 4) f32, or (4, B) f32 if feature_major_output=True
    (fully lane-dense stores; preferred when the consumer can take it).
    """
    if x_feature_major:
        F, B = x.shape
    else:
        B, F = x.shape
    assert F == 9, f"expected 9 input features, got {F}"

    vmem_cap = _tpu_vmem_capacity()
    if b_tile is None:
        # v7x (64 MiB VMEM/TC): 8K rows; v5e/v6e (128 MiB): 16K rows.
        b_tile = 8192 if vmem_cap <= (64 << 20) else 16384
    bt, n_tiles = _choose_tiling(B, b_tile)
    B_pad = bt * n_tiles

    cd, ed = compute_dtype, epilogue_dtype

    # Feature-major activation stream with a folded ones-row: (10, B_pad).
    xt = x.astype(cd) if x_feature_major else x.astype(cd).T            # (9, B)
    x_fm = jnp.concatenate([xt, jnp.ones((1, B), cd)], axis=0)          # (10, B)
    if B_pad != B:
        x_fm = jnp.pad(x_fm, ((0, 0), (0, B_pad - B)))

    # Weights: layer-1 bias folded as a 10th column; biases in epilogue/f32 dtypes.
    w1a = jnp.concatenate([params["w1"], params["b1"]], axis=1).astype(cd)  # (128,10)
    w2 = params["w2"].astype(cd)                                            # (64,128)
    b2 = params["b2"].astype(ed)                                            # (64,1)
    w3 = params["w3"].astype(cd)                                            # (4,64)

    batch_major = not feature_major_output
    if batch_major:
        b3 = params["b3"].reshape(1, 4).astype(jnp.float32)
        out_shape = jax.ShapeDtypeStruct((B_pad, 4), jnp.float32)
        out_spec = pl.BlockSpec((bt, 4), lambda i: (i, 0))
    else:
        b3 = params["b3"].astype(jnp.float32)                               # (4,1)
        out_shape = jax.ShapeDtypeStruct((4, B_pad), jnp.float32)
        out_spec = pl.BlockSpec((4, bt), lambda i: (0, i))

    if vmem_limit_bytes is None:
        vmem_limit_bytes = _vmem_limit(bt, batch_major, vmem_cap)

    const = lambda i: (0, 0)  # weights/biases fetched once, VMEM-resident
    out = pl.pallas_call(
        _make_kernel(cd, ed, batch_major),
        out_shape=out_shape,
        grid=(n_tiles,),
        in_specs=[
            pl.BlockSpec((10, bt), lambda i: (0, i)),      # activation stream
            pl.BlockSpec(w1a.shape, const),
            pl.BlockSpec(w2.shape, const),
            pl.BlockSpec(b2.shape, const),
            pl.BlockSpec(w3.shape, const),
            pl.BlockSpec(b3.shape, const),
        ],
        out_specs=out_spec,
        compiler_params=pltpu.CompilerParams(
            dimension_semantics=("parallel",),             # shard batch tiles over TCs
            vmem_limit_bytes=int(vmem_limit_bytes),
        ),
    )(x_fm, w1a, w2, b2, w3, b3)

    if batch_major:
        return out[:B, :]
    return out[:, :B]


# ---------------------------------------------------------------------------
# Parameter init matching the PyTorch module.
# ---------------------------------------------------------------------------
def xavier_uniform(key, shape_out_in):
    fan_out, fan_in = shape_out_in
    limit = (6.0 / (fan_in + fan_out)) ** 0.5
    return jax.random.uniform(key, shape_out_in, jnp.float32, -limit, limit)


def linear_default_init(key, shape_out_in):
    fan_in = shape_out_in[1]
    bound = 1.0 / (fan_in ** 0.5)
    return jax.random.uniform(key, shape_out_in, jnp.float32, -bound, bound)


def make_params(key):
    k = jax.random.split(key, 6)
    w1 = xavier_uniform(k[0], (128, 9))
    w2 = xavier_uniform(k[1], (64, 128))
    w3 = linear_default_init(k[2], (4, 64))
    b1 = jax.random.uniform(k[3], (128, 1), jnp.float32, -1.0 / 3.0, 1.0 / 3.0)
    b2 = jax.random.uniform(k[4], (64, 1), jnp.float32,
                            -1.0 / (128 ** 0.5), 1.0 / (128 ** 0.5))
    b3 = jax.random.uniform(k[5], (4, 1), jnp.float32, -1.0 / 8.0, 1.0 / 8.0)
    return {"w1": w1, "b1": b1, "w2": w2, "b2": b2, "w3": w3, "b3": b3}


def reference_forward(x, params):
    p = lax.Precision.HIGHEST
    h1 = _leaky_relu(jnp.dot(x, params["w1"].T, precision=p) + params["b1"][:, 0])
    h2 = _leaky_relu(jnp.dot(h1, params["w2"].T, precision=p) + params["b2"][:, 0])
    return jnp.dot(h2, params["w3"].T, precision=p) + params["b3"][:, 0]


if __name__ == "__main__":
    key = jax.random.PRNGKey(0)
    pkey, xkey = jax.random.split(key)
    params = make_params(pkey)

    # 1) Small batch, default (bf16 compute, f32 accumulation/epilogue, (B,4) out).
    x_small = jax.random.normal(xkey, (8, 9), jnp.float32)
    ref_small = reference_forward(x_small, params)
    out_small = jax.block_until_ready(accident_severity_forward(x_small, params))
    assert out_small.shape == (8, 4), out_small.shape
    assert jnp.allclose(out_small, ref_small, atol=1e-1, rtol=1e-1), \
        "small-batch bf16 mismatch vs reference"

    # 2) Full f32 path: exact (tight tolerance), same code path.
    out_f32 = jax.block_until_ready(
        accident_severity_forward(x_small, params, compute_dtype=jnp.float32))
    assert jnp.allclose(out_f32, ref_small, atol=1e-4, rtol=1e-4), \
        "f32 path mismatch vs reference"

    # 3) Batch not divisible by the tile: exercises grid/padding/even-tile path.
    x_big = jax.random.normal(xkey, (300, 9), jnp.float32)
    ref_big = reference_forward(x_big, params)
    out_big = jax.block_until_ready(
        accident_severity_forward(x_big, params, b_tile=128,
                                  compute_dtype=jnp.float32))
    assert out_big.shape == (300, 4), out_big.shape
    assert jnp.allclose(out_big, ref_big, atol=1e-4, rtol=1e-4), \
        "tiled-batch mismatch vs reference"

    # 4) Fastest configuration: feature-major (4, B) output, bf16 compute +
    #    bf16 epilogue (f32 accumulation kept) -- looser tolerance.
    out_fm = jax.block_until_ready(
        accident_severity_forward(x_big, params, b_tile=128,
                                  feature_major_output=True,
                                  epilogue_dtype=jnp.bfloat16))
    assert out_fm.shape == (4, 300), out_fm.shape
    assert jnp.allclose(out_fm.T, ref_big, atol=1e-1, rtol=1e-1), \
        "feature-major bf16 path mismatch vs reference"

    print("KERNEL_OK")
</pallas_src>

<mosaic_0001>
module attributes {stable_mosaic.version = 11 : i64} {
  func.func @kernel(%arg0: i32, %arg1: memref<10x128xbf16, #tpu.memory_space<vmem>>, %arg2: memref<128x10xbf16, #tpu.memory_space<vmem>>, %arg3: memref<64x128xbf16, #tpu.memory_space<vmem>>, %arg4: memref<64x1xf32, #tpu.memory_space<vmem>>, %arg5: memref<4x64xbf16, #tpu.memory_space<vmem>>, %arg6: memref<1x4xf32, #tpu.memory_space<vmem>>, %arg7: memref<128x4xf32, #tpu.memory_space<vmem>>) attributes {dimension_semantics = [#tpu.dimension_semantics<parallel>], iteration_bounds = array<i64: 1>, scalar_prefetch = 0 : i64, scratch_operands = 0 : i64, tpu.core_type = #tpu.core_type<tc>, window_params = [{transform_indices = @transform_0, window_bounds = array<i64: 10, 128>}, {pipeline_mode = #tpu.pipeline_mode<synchronous>, transform_indices = @transform_1, window_bounds = array<i64: 128, 10>}, {pipeline_mode = #tpu.pipeline_mode<synchronous>, transform_indices = @transform_2, window_bounds = array<i64: 64, 128>}, {pipeline_mode = #tpu.pipeline_mode<synchronous>, transform_indices = @transform_3, window_bounds = array<i64: 64, 1>}, {pipeline_mode = #tpu.pipeline_mode<synchronous>, transform_indices = @transform_4, window_bounds = array<i64: 4, 64>}, {pipeline_mode = #tpu.pipeline_mode<synchronous>, transform_indices = @transform_5, window_bounds = array<i64: 1, 4>}, {transform_indices = @transform_6, window_bounds = array<i64: 128, 4>}]} {
    %c0 = arith.constant 0 : index
    %c0_0 = arith.constant 0 : index
    %0 = vector.load %arg2[%c0, %c0_0] : memref<128x10xbf16, #tpu.memory_space<vmem>>, vector<128x10xbf16>
    %c0_1 = arith.constant 0 : index
    %c0_2 = arith.constant 0 : index
    %1 = vector.load %arg1[%c0_1, %c0_2] : memref<10x128xbf16, #tpu.memory_space<vmem>>, vector<10x128xbf16>
    %cst = arith.constant dense<0.000000e+00> : vector<128x128xf32>
    %2 = tpu.matmul %0, %1, %cst {dimension_numbers = #tpu.dot_dimension_numbers<[1], [0], [0], [1], [0, 0, 1, 1], [], []>} : vector<128x10xbf16>, vector<10x128xbf16>, vector<128x128xf32> -> vector<128x128xf32>
    %cst_3 = arith.constant 0.00999999977 : f32
    %3 = vector.broadcast %cst_3 : f32 to vector<128x128xf32>
    %4 = arith.mulf %3, %2 : vector<128x128xf32>
    %5 = arith.maximumf %2, %4 : vector<128x128xf32>
    %6 = arith.truncf %5 : vector<128x128xf32> to vector<128x128xbf16>
    %c0_4 = arith.constant 0 : index
    %c0_5 = arith.constant 0 : index
    %7 = vector.load %arg3[%c0_4, %c0_5] : memref<64x128xbf16, #tpu.memory_space<vmem>>, vector<64x128xbf16>
    %cst_6 = arith.constant dense<0.000000e+00> : vector<64x128xf32>
    %8 = tpu.matmul %7, %6, %cst_6 {dimension_numbers = #tpu.dot_dimension_numbers<[1], [0], [0], [1], [0, 0, 1, 1], [], []>} : vector<64x128xbf16>, vector<128x128xbf16>, vector<64x128xf32> -> vector<64x128xf32>
    %c0_7 = arith.constant 0 : index
    %c0_8 = arith.constant 0 : index
    %9 = vector.load %arg4[%c0_7, %c0_8] : memref<64x1xf32, #tpu.memory_space<vmem>>, vector<64x1xf32>
    %10 = vector.broadcast %9 : vector<64x1xf32> to vector<64x128xf32>
    %11 = arith.addf %8, %10 : vector<64x128xf32>
    %cst_9 = arith.constant 0.00999999977 : f32
    %12 = vector.broadcast %cst_9 : f32 to vector<64x128xf32>
    %13 = arith.mulf %12, %11 : vector<64x128xf32>
    %14 = arith.maximumf %11, %13 : vector<64x128xf32>
    %15 = arith.truncf %14 : vector<64x128xf32> to vector<64x128xbf16>
    %c0_10 = arith.constant 0 : index
    %c0_11 = arith.constant 0 : index
    %16 = vector.load %arg5[%c0_10, %c0_11] : memref<4x64xbf16, #tpu.memory_space<vmem>>, vector<4x64xbf16>
    %cst_12 = arith.constant dense<0.000000e+00> : vector<128x4xf32>
    %17 = tpu.matmul %15, %16, %cst_12 {dimension_numbers = #tpu.dot_dimension_numbers<[0], [1], [1], [0], [0, 1, 1, 0], [], []>} : vector<64x128xbf16>, vector<4x64xbf16>, vector<128x4xf32> -> vector<128x4xf32>
    %c0_13 = arith.constant 0 : index
    %c0_14 = arith.constant 0 : index
    %18 = vector.load %arg6[%c0_13, %c0_14] : memref<1x4xf32, #tpu.memory_space<vmem>>, vector<1x4xf32>
    %19 = vector.broadcast %18 : vector<1x4xf32> to vector<128x4xf32>
    %20 = arith.addf %17, %19 : vector<128x4xf32>
    %c0_15 = arith.constant 0 : index
    %c0_16 = arith.constant 0 : index
    %21 = vector.load %arg7[%c0_15, %c0_16] : memref<128x4xf32, #tpu.memory_space<vmem>>, vector<128x4xf32>
    tpu.vector_store %arg7[%c0_15, %c0_16], %20 {strides = array<i32>} : memref<128x4xf32, #tpu.memory_space<vmem>>, vector<128x4xf32>,
    return
  }
  func.func @transform_0(%arg0: i32) -> (i32, i32) {
    %c0_i32 = arith.constant 0 : i32
    %c0_i32_0 = arith.constant 0 : i32
    return %c0_i32, %arg0 : i32, i32
  }
  func.func @transform_1(%arg0: i32) -> (i32, i32) {
    %c0_i32 = arith.constant 0 : i32
    %c0_i32_0 = arith.constant 0 : i32
    %c0_i32_1 = arith.constant 0 : i32
    return %c0_i32, %c0_i32_0 : i32, i32
  }
  func.func @transform_2(%arg0: i32) -> (i32, i32) {
    %c0_i32 = arith.constant 0 : i32
    %c0_i32_0 = arith.constant 0 : i32
    %c0_i32_1 = arith.constant 0 : i32
    return %c0_i32, %c0_i32_0 : i32, i32
  }
  func.func @transform_3(%arg0: i32) -> (i32, i32) {
    %c0_i32 = arith.constant 0 : i32
    %c0_i32_0 = arith.constant 0 : i32
    %c0_i32_1 = arith.constant 0 : i32
    return %c0_i32, %c0_i32_0 : i32, i32
  }
  func.func @transform_4(%arg0: i32) -> (i32, i32) {
    %c0_i32 = arith.constant 0 : i32
    %c0_i32_0 = arith.constant 0 : i32
    %c0_i32_1 = arith.constant 0 : i32
    return %c0_i32, %c0_i32_0 : i32, i32
  }
  func.func @transform_5(%arg0: i32) -> (i32, i32) {
    %c0_i32 = arith.constant 0 : i32
    %c0_i32_0 = arith.constant 0 : i32
    %c0_i32_1 = arith.constant 0 : i32
    return %c0_i32, %c0_i32_0 : i32, i32
  }
  func.func @transform_6(%arg0: i32) -> (i32, i32) {
    %c0_i32 = arith.constant 0 : i32
    %c0_i32_0 = arith.constant 0 : i32
    return %arg0, %c0_i32 : i32, i32
  }
}

</mosaic_0001>

<bundles_post_ra>
// kernel: tpu_custom_call.1
= control target key start
LH: loop header
LB: loop body
LE: loop exit
PB: predicated region body
PF: predicated region fallthrough
CT: control target
= control target key end

     0   :  { %vm112_vm0 = vcmask 1044480   ;;  %vm87_vm1 = vcmask 80896   ;;  %v541_v48 = vmov 0   ;;  %vm355_vm2 = vcmask 523264   ;;  %s725_s0 = inlined_call_operand.vmem [shape: bf16[10,128], index: 0, kind: input, shape index: {}]   ;;  %s726_s1 = inlined_call_operand.vmem [shape: bf16[128,10], index: 1, kind: input, shape index: {}]   ;;  %s727_s3 = inlined_call_operand.vmem [shape: f32[64,1], index: 3, kind: input, shape index: {}]   ;;  %s728_s2 = inlined_call_operand.vmem [shape: bf16[64,128], index: 2, kind: input, shape index: {}]   ;;  %s729_s4 = inlined_call_operand.vmem [shape: bf16[4,64], index: 4, kind: input, shape index: {}]   ;;  %s730_s5 = inlined_call_operand.vmem [shape: f32[1,4], index: 5, kind: input, shape index: {}]   ;;  %s731_s6 = inlined_call_operand.vmem [shape: f32[128,4], index: 6, kind: output, shape index: {}]  }
   0x1   :  { %v487_v0 = vld [vmem:[%s725_s0] sm:$0xf]  ;;  %v529_v1 = vld [vmem:[%s725_s0] sm:$0x10]  ;;  %v527_v5 = vld [vmem:[%s726_s1 + $0x30] sm:$0xff]  ;;  %537 = vset.pattern.permute.xlu0 %v541_v48  ;;  %538 = vset.pattern.permute.xlu1 %v541_v48  ;;  %vm432_vm3 = vcmask 31744  }
   0x2   :  { %v488_v2 = vor.u32 %v529_v1, %v487_v0  ;;  %v521_v4 = vld [vmem:[%s726_s1] sm:$0xff]  ;;  %v522_v6 = vld [vmem:[%s726_s1 + $0x8] sm:$0xff]  ;;  %v528_v7 = vld [vmem:[%s726_s1 + $0x38] sm:$0xff]  ;;  %539 = vset.pattern.permute.xlu2 %v541_v48 }
   0x3   :  { %v523_v8 = vld [vmem:[%s726_s1 + $0x10] sm:$0xff]  ;;  %v524_v9 = vld [vmem:[%s726_s1 + $0x18] sm:$0xff]  ;;  %v525_v10 = vld [vmem:[%s726_s1 + $0x20] sm:$0xff] }
   0x4   :  { %v114_v3 = vsel %vm112_vm0, %v488_v2, 0  ;;  %v526_v11 = vld [vmem:[%s726_s1 + $0x28] sm:$0xff]  ;;  %v213_v46 = vld [vmem:[%s727_s3] sm:$0xff]  ;;  %v215_v50 = vld [vmem:[%s727_s3 + $0x10] sm:$0xff] }
   0x5   :  { %123 = vmatpush.bf16.msra.mxu0 %v114_v3  ;;  %534 = vmatpush.bf16.msra.mxu3 %v114_v3  ;;  %v214_v49 = vld [vmem:[%s727_s3 + $0x8] sm:$0xff]  ;;  %v219_v61 = vld [vmem:[%s727_s3 + $0x30] sm:$0xff] }
   0x6   :  { %223 = vperm.xlu0 %537, %v213_v46   ;;  %233 = vperm.xlu1 %538, %v215_v50  }
   0x8   :  { %489 = vmatmul.msk.bf16.vlgmr.msra.gmra.mxu0 %vm87_vm1, %v521_v4  ;;  %495 = vmatmul.msk.bf16.vlgmr.msra.gmra.mxu3 %vm87_vm1, %v527_v5 }
   0xe   :  { %228 = vperm.xlu0 %537, %v214_v49  }
  0x16   :  { %253 = vperm.xlu0 %537, %v219_v61  }
  0x18   :  { %490 = vmatmul.msk.bf16.gmra.mxu0 %vm87_vm1, %v522_v6  ;;  %496 = vmatmul.msk.bf16.gmra.mxu3 %vm87_vm1, %v528_v7  ;;  %v216_v7 = vld [vmem:[%s727_s3 + $0x18] sm:$0xff] }
  0x19   :  { %238 = vperm.xlu1 %538, %v216_v7   ;;  %v540_v7 = vld [vmem:[%s730_s5] ss:$0 sm:$0xff] }
  0x28   :  { %491 = vmatmul.msk.bf16.gmra.mxu0 %vm87_vm1, %v523_v8 }
  0x38   :  { %492 = vmatmul.msk.bf16.gmra.mxu0 %vm87_vm1, %v524_v9 }
  0x48   :  { %493 = vmatmul.msk.bf16.gmra.mxu0 %vm87_vm1, %v525_v10  ;;  %v220_v10 = vld [vmem:[%s727_s3 + $0x38] sm:$0xff] }
  0x49   :  { %258 = vperm.xlu1 %538, %v220_v10  }
  0x58   :  { %494 = vmatmul.msk.bf16.gmra.mxu0 %vm87_vm1, %v526_v11  ;;  %v530_v11 = vld [vmem:[%s728_s2] sm:$0xff] }
  0x85   :  { %v125_v12 = vpop.f32.mrf.mxu0 }
  0x86   :  { %v165_v14 = vmul.f32 0.01, %v125_v12 }
  0x88   :  { %v181_v17 = vmax.f32 %v125_v12, %v165_v14  ;;  %v531_v12 = vld [vmem:[%s728_s2 + $0x8] sm:$0xff] }
  0x89   :  { %v218_v14 = vld [vmem:[%s727_s3 + $0x28] sm:$0xff] }
  0x8b   :  { %v155_v13 = vpop.f32.mrf.mxu3 }
  0x8c   :  { %v177_v29 = vmul.f32 0.01, %v155_v13 }
  0x8d   :  { %v127_v15 = vpop.f32.mrf.mxu0 }
  0x8e   :  { %v166_v16 = vmul.f32 0.01, %v127_v15  ;;  %v193_v36 = vmax.f32 %v155_v13, %v177_v29  ;;  %v217_v13 = vld [vmem:[%s727_s3 + $0x20] sm:$0xff] }
  0x8f   :  { %243 = vperm.xlu2 %539, %v217_v13  }
  0x90   :  { %v182_v18 = vmax.f32 %v127_v15, %v166_v16  ;;  %v532_v15 = vld [vmem:[%s728_s2 + $0x10] sm:$0xff]  ;;  %v533_v16 = vld [vmem:[%s728_s2 + $0x18] sm:$0xff] }
  0x92   :  { %v607_v19 = vpack.c.bf16 %v182_v18, %v181_v17  ;;  %v224_v17 = vpop.permute.xlu0 %223 }
  0x93   :  { %v157_v20 = vpop.f32.mrf.mxu3 }
  0x94   :  { %v178_v30 = vmul.f32 0.01, %v157_v20 }
  0x95   :  { %v130_v21 = vpop.f32.mrf.mxu0 }
  0x96   :  { %v167_v23 = vmul.f32 0.01, %v130_v21  ;;  %v194_v37 = vmax.f32 %v157_v20, %v178_v30 }
  0x97   :  { %248 = vperm.xlu2 %539, %v218_v14  }
  0x98   :  { %v183_v26 = vmax.f32 %v130_v21, %v167_v23  ;;  %v203_v40 = vpack.c.bf16 %v194_v37, %v193_v36 }
  0x9a   :  { %v229_v20 = vpop.permute.xlu0 %228 }
  0x9b   :  { %v160_v22 = vpop.f32.mrf.mxu3 }
  0x9c   :  { %v179_v28 = vmul.f32 0.01, %v160_v22 }
  0x9d   :  { %v132_v24 = vpop.f32.mrf.mxu0 }
  0x9e   :  { %v168_v25 = vmul.f32 0.01, %v132_v24  ;;  %v195_v33 = vmax.f32 %v160_v22, %v179_v28 }
  0xa0   :  { %v184_v27 = vmax.f32 %v132_v24, %v168_v25 }
  0xa2   :  { %v198_v31 = vpack.c.bf16 %v184_v27, %v183_v26  ;;  %v234_v27 = vpop.permute.xlu1 %233 }
  0xa3   :  { %v162_v32 = vpop.f32.mrf.mxu3 }
  0xa4   :  { %v180_v34 = vmul.f32 0.01, %v162_v32 }
  0xa5   :  { %v135_v35 = vpop.f32.mrf.mxu0 }
  0xa6   :  { %v196_v38 = vmax.f32 %v162_v32, %v180_v34  ;;  %v169_v3 = vmul.f32 0.01, %v135_v35 }
  0xa8   :  { %v204_v39 = vpack.c.bf16 %v196_v38, %v195_v33  ;;  %v185_v8 = vmax.f32 %v135_v35, %v169_v3 }
  0xaa   :  { %285 = vmatpush.bf16.msra.mxu1 %v204_v39 }
  0xad   :  { %v137_v41 = vpop.f32.mrf.mxu0 }
  0xae   :  { %286 = vmatpush.bf16.msra.mxu1 %v203_v40  ;;  %v170_v0 = vmul.f32 0.01, %v137_v41 }
  0xb0   :  { %v186_v5 = vmax.f32 %v137_v41, %v170_v0  ;;  %v334_v41 = vld [vmem:[%s729_s4] sm:$0x3] }
  0xb2   :  { %v199_v9 = vpack.c.bf16 %v186_v5, %v185_v8 }
  0xb5   :  { %v140_v42 = vpop.f32.mrf.mxu0 }
  0xb6   :  { %v171_v62 = vmul.f32 0.01, %v140_v42 }
  0xb8   :  { %v187_v4 = vmax.f32 %v140_v42, %v171_v62  ;;  %v381_v42 = vsel %vm355_vm2, %v334_v41, 0 }
  0xb9   :  { %390 = vmatpush.bf16.xpose.msra.mxu2 %v381_v42  ;;  %535 = vmatpush.bf16.xpose.msrb.mxu3 %v381_v42 }
  0xbd   :  { %v142_v43 = vpop.f32.mrf.mxu0 }
  0xbe   :  { %v172_v58 = vmul.f32 0.01, %v142_v43 }
  0xc0   :  { %v188_v1 = vmax.f32 %v142_v43, %v172_v58 }
  0xc2   :  { %v200_v6 = vpack.c.bf16 %v188_v1, %v187_v4 }
  0xc5   :  { %v145_v44 = vpop.f32.mrf.mxu0 }
  0xc6   :  { %v173_v55 = vmul.f32 0.01, %v145_v44 }
  0xc8   :  { %v189_v63 = vmax.f32 %v145_v44, %v173_v55 }
  0xcd   :  { %v147_v45 = vpop.f32.mrf.mxu0 }
  0xce   :  { %v174_v53 = vmul.f32 0.01, %v147_v45 }
  0xd0   :  { %v190_v59 = vmax.f32 %v147_v45, %v174_v53  ;;  %v254_v53 = vpop.permute.xlu0 %253 }
  0xd2   :  { %v201_v2 = vpack.c.bf16 %v190_v59, %v189_v63 }
  0xd5   :  { %v150_v47 = vpop.f32.mrf.mxu0 }
  0xd6   :  { %v175_v51 = vmul.f32 0.01, %v150_v47 }
  0xd8   :  { %v191_v56 = vmax.f32 %v150_v47, %v175_v51 }
  0xdd   :  { %v152_v52 = vpop.f32.mrf.mxu0 }
  0xde   :  { %v176_v54 = vmul.f32 0.01, %v152_v52 }
  0xe0   :  { %v192_v57 = vmax.f32 %v152_v52, %v176_v54 }
  0xe2   :  { %v202_v60 = vpack.c.bf16 %v192_v57, %v191_v56 }
  0xe4   :  { %287 = vmatpush.bf16.msra.mxu1 %v202_v60 }
  0xe8   :  { %288 = vmatpush.bf16.msra.mxu1 %v201_v2 }
  0xe9   :  { %v244_v38 = vpop.permute.xlu2 %243 }
  0xec   :  { %289 = vmatpush.bf16.msra.mxu1 %v200_v6 }
  0xf0   :  { %290 = vmatpush.bf16.msra.mxu1 %v199_v9 }
  0xf1   :  { %v249_v44 = vpop.permute.xlu2 %248 }
  0xf4   :  { %291 = vmatpush.bf16.msra.mxu1 %v198_v31  ;;  %v239_v31 = vpop.permute.xlu1 %238 }
  0xf8   :  { %292 = vmatpush.bf16.msra.mxu1 %v607_v19 }
  0xfb   :  { %293 = vmatmul.bf16.vlgmr.msra.gmra.mxu1 %v530_v11 }
  0xfc   :  { %v259_v55 = vpop.permute.xlu1 %258 }
 0x10b   :  { %298 = vmatmul.bf16.gmra.mxu1 %v531_v12 }
 0x11b   :  { %303 = vmatmul.bf16.gmra.mxu1 %v532_v15 }
 0x12b   :  { %308 = vmatmul.bf16.gmra.mxu1 %v533_v16 }
 0x178   :  { %v294_v18 = vpop.f32.mrf.mxu1 }
 0x179   :  { %v295_v19 = vadd.f32 %v294_v18, %v224_v17 }
 0x17b   :  { %v314_v22 = vmul.f32 0.01, %v295_v19 }
 0x17d   :  { %v322_v25 = vmax.f32 %v295_v19, %v314_v22 }
 0x180   :  { %v296_v21 = vpop.f32.mrf.mxu1 }
 0x181   :  { %v297_v23 = vadd.f32 %v296_v21, %v229_v20 }
 0x183   :  { %v315_v24 = vmul.f32 0.01, %v297_v23 }
 0x185   :  { %v323_v26 = vmax.f32 %v297_v23, %v315_v24 }
 0x187   :  { %v330_v28 = vpack.c.bf16 %v323_v26, %v322_v25 }
 0x188   :  { %v299_v29 = vpop.f32.mrf.mxu1 }
 0x189   :  { %339 = vxpose.xlu2.c.b16.start [1/4] (short) %v330_v28, 128  ;;  %v300_v30 = vadd.f32 %v299_v29, %v234_v27 }
 0x18b   :  { %v316_v33 = vmul.f32 0.01, %v300_v30 }
 0x18d   :  { %v324_v36 = vmax.f32 %v300_v30, %v316_v33 }
 0x190   :  { %v301_v32 = vpop.f32.mrf.mxu1 }
 0x191   :  { %v302_v34 = vadd.f32 %v301_v32, %v239_v31 }
 0x193   :  { %v317_v35 = vmul.f32 0.01, %v302_v34 }
 0x195   :  { %v325_v37 = vmax.f32 %v302_v34, %v317_v35 }
 0x197   :  { %v331_v39 = vpack.c.bf16 %v325_v37, %v324_v36 }
 0x198   :  { %v304_v40 = vpop.f32.mrf.mxu1 }
 0x199   :  { %340 = vxpose.xlu2.c.b16.cont [2/4] (short) %v331_v39, 128  ;;  %v305_v43 = vadd.f32 %v304_v40, %v244_v38 }
 0x19b   :  { %v318_v46 = vmul.f32 0.01, %v305_v43 }
 0x19d   :  { %v326_v49 = vmax.f32 %v305_v43, %v318_v46 }
 0x1a0   :  { %v306_v45 = vpop.f32.mrf.mxu1 }
 0x1a1   :  { %v307_v47 = vadd.f32 %v306_v45, %v249_v44 }
 0x1a3   :  { %v319_v48 = vmul.f32 0.01, %v307_v47 }
 0x1a5   :  { %v327_v50 = vmax.f32 %v307_v47, %v319_v48 }
 0x1a7   :  { %v332_v51 = vpack.c.bf16 %v327_v50, %v326_v49 }
 0x1a8   :  { %v309_v52 = vpop.f32.mrf.mxu1 }
 0x1a9   :  { %341 = vxpose.xlu2.c.b16.cont [3/4] (short) %v332_v51, 128  ;;  %v310_v54 = vadd.f32 %v309_v52, %v254_v53 }
 0x1ab   :  { %v320_v57 = vmul.f32 0.01, %v310_v54 }
 0x1ad   :  { %v328_v60 = vmax.f32 %v310_v54, %v320_v57 }
 0x1b0   :  { %v311_v56 = vpop.f32.mrf.mxu1 }
 0x1b1   :  { %v312_v58 = vadd.f32 %v311_v56, %v259_v55 }
 0x1b3   :  { %v321_v59 = vmul.f32 0.01, %v312_v58 }
 0x1b5   :  { %v329_v61 = vmax.f32 %v312_v58, %v321_v59 }
 0x1b7   :  { %v333_v62 = vpack.c.bf16 %v329_v61, %v328_v60 }
 0x1b9   :  { %342 = vxpose.xlu2.c.b16.end [4/4] (short) %v333_v62, 128 }
 0x22a   :  { %v347_v63 = vpop.trf.xlu2 }
 0x22b   :  { %513 = vmatmul.msk.bf16.vlgmr.msra.gmra.mxu2 %vm355_vm2, %v347_v63 }
 0x23a   :  { %v348_v0 = vpop.trf.xlu2 }
 0x23b   :  { %514 = vmatmul.msk.bf16.gmra.mxu2 %vm355_vm2, %v348_v0 }
 0x24a   :  { %v349_v1 = vpop.trf.xlu2 }
 0x24b   :  { %515 = vmatmul.msk.bf16.gmra.mxu2 %vm355_vm2, %v349_v1 }
 0x25a   :  { %v350_v2 = vpop.trf.xlu2 }
 0x25b   :  { %516 = vmatmul.msk.bf16.gmra.mxu2 %vm355_vm2, %v350_v2 }
 0x26a   :  { %v351_v3 = vpop.trf.xlu2 }
 0x26b   :  { %517 = vmatmul.msk.bf16.gmra.mxu2 %vm355_vm2, %v351_v3 }
 0x27a   :  { %v352_v4 = vpop.trf.xlu2 }
 0x27b   :  { %518 = vmatmul.msk.bf16.gmra.mxu2 %vm355_vm2, %v352_v4 }
 0x28a   :  { %v353_v5 = vpop.trf.xlu2 }
 0x28b   :  { %519 = vmatmul.msk.bf16.vlgmr.msrb.gmra.mxu3 %vm355_vm2, %v353_v5 }
 0x29a   :  { %v354_v6 = vpop.trf.xlu2 }
 0x29b   :  { %520 = vmatmul.msk.bf16.gmra.mxu3 %vm355_vm2, %v354_v6 }
 0x2ae   :  { %v392_v8 = vpop.f32.mrf.mxu2 }
 0x2af   :  { %v393_v9 = vadd.f32 %v540_v7, %v392_v8 }
 0x2b1   :  { %433 = vst.msk [vmem:[%s731_s6] sm:$0xff] %vm432_vm3, %v393_v9 }
 0x2b6   :  { %v394_v10 = vpop.f32.mrf.mxu2 }
 0x2b7   :  { %v395_v11 = vadd.f32 %v540_v7, %v394_v10 }
 0x2b9   :  { %434 = vst.msk [vmem:[%s731_s6 + $0x8] sm:$0xff] %vm432_vm3, %v395_v11 }
 0x2be   :  { %v397_v12 = vpop.f32.mrf.mxu2 }
 0x2bf   :  { %v398_v13 = vadd.f32 %v540_v7, %v397_v12 }
 0x2c1   :  { %435 = vst.msk [vmem:[%s731_s6 + $0x10] sm:$0xff] %vm432_vm3, %v398_v13 }
 0x2c6   :  { %v399_v14 = vpop.f32.mrf.mxu2 }
 0x2c7   :  { %v400_v15 = vadd.f32 %v540_v7, %v399_v14 }
 0x2c9   :  { %436 = vst.msk [vmem:[%s731_s6 + $0x18] sm:$0xff] %vm432_vm3, %v400_v15 }
 0x2ce   :  { %v402_v16 = vpop.f32.mrf.mxu2 }
 0x2cf   :  { %v403_v17 = vadd.f32 %v540_v7, %v402_v16 }
 0x2d1   :  { %437 = vst.msk [vmem:[%s731_s6 + $0x20] sm:$0xff] %vm432_vm3, %v403_v17 }
 0x2d6   :  { %v404_v18 = vpop.f32.mrf.mxu2 }
 0x2d7   :  { %v405_v19 = vadd.f32 %v540_v7, %v404_v18 }
 0x2d9   :  { %438 = vst.msk [vmem:[%s731_s6 + $0x28] sm:$0xff] %vm432_vm3, %v405_v19 }
 0x2de   :  { %v407_v20 = vpop.f32.mrf.mxu2 }
 0x2df   :  { %v408_v21 = vadd.f32 %v540_v7, %v407_v20 }
 0x2e1   :  { %439 = vst.msk [vmem:[%s731_s6 + $0x30] sm:$0xff] %vm432_vm3, %v408_v21 }
 0x2e6   :  { %v409_v22 = vpop.f32.mrf.mxu2 }
 0x2e7   :  { %v410_v23 = vadd.f32 %v540_v7, %v409_v22 }
 0x2e9   :  { %440 = vst.msk [vmem:[%s731_s6 + $0x38] sm:$0xff] %vm432_vm3, %v410_v23 }
 0x2ee   :  { %v412_v24 = vpop.f32.mrf.mxu2 }
 0x2ef   :  { %v413_v25 = vadd.f32 %v540_v7, %v412_v24 }
 0x2f1   :  { %441 = vst.msk [vmem:[%s731_s6 + $0x40] sm:$0xff] %vm432_vm3, %v413_v25 }
 0x2f6   :  { %v414_v26 = vpop.f32.mrf.mxu2 }
 0x2f7   :  { %v415_v27 = vadd.f32 %v540_v7, %v414_v26 }
 0x2f9   :  { %442 = vst.msk [vmem:[%s731_s6 + $0x48] sm:$0xff] %vm432_vm3, %v415_v27 }
 0x2fe   :  { %v417_v28 = vpop.f32.mrf.mxu2 }
 0x2ff   :  { %v418_v29 = vadd.f32 %v540_v7, %v417_v28 }
 0x301   :  { %443 = vst.msk [vmem:[%s731_s6 + $0x50] sm:$0xff] %vm432_vm3, %v418_v29 }
 0x306   :  { %v419_v30 = vpop.f32.mrf.mxu2 }
 0x307   :  { %v420_v31 = vadd.f32 %v540_v7, %v419_v30 }
 0x309   :  { %444 = vst.msk [vmem:[%s731_s6 + $0x58] sm:$0xff] %vm432_vm3, %v420_v31 }
 0x30e   :  { %v422_v32 = vpop.f32.mrf.mxu3 }
 0x30f   :  { %v423_v33 = vadd.f32 %v540_v7, %v422_v32 }
 0x311   :  { %445 = vst.msk [vmem:[%s731_s6 + $0x60] sm:$0xff] %vm432_vm3, %v423_v33 }
 0x316   :  { %v424_v34 = vpop.f32.mrf.mxu3 }
 0x317   :  { %v425_v35 = vadd.f32 %v540_v7, %v424_v34 }
 0x319   :  { %446 = vst.msk [vmem:[%s731_s6 + $0x68] sm:$0xff] %vm432_vm3, %v425_v35 }
 0x31e   :  { %v427_v36 = vpop.f32.mrf.mxu3 }
 0x31f   :  { %v428_v37 = vadd.f32 %v540_v7, %v427_v36 }
 0x321   :  { %447 = vst.msk [vmem:[%s731_s6 + $0x70] sm:$0xff] %vm432_vm3, %v428_v37 }
 0x326   :  { %v429_v38 = vpop.f32.mrf.mxu3 }
 0x327   :  { %v430_v39 = vadd.f32 %v540_v7, %v429_v38 }
 0x329   :  { %448 = vst.msk [vmem:[%s731_s6 + $0x78] sm:$0xff] %vm432_vm3, %v430_v39 }

</bundles_post_ra>
